<compile_context>
chip_gen: v7x
topology: tpu7x:2x2x1
jax: 0.10.0
libtpu: 0.0.40
codegen_flags: <defaults>
</compile_context>

<pallas_src>
import jax
import jax.numpy as jnp
from jax.experimental import pallas as pl
from jax.experimental.pallas import tpu as pltpu


def _order_attention_kernel(x_ref, w_ref, b_ref, u_ref, out_ref, alpha_ref):
    # x_ref:     (S, BT, H)  contiguous slab of the original (S, B, H) input
    # w_ref:     (H, A)      resident across the grid (constant block index)
    # b_ref:     (1, A)
    # u_ref:     (1, A)
    # out_ref:   (BT, S, H)  block of the (B, S, H) output
    # alpha_ref: (BT, S)     block of the (B, S) attention weights
    S, BT, H = x_ref.shape
    A = w_ref.shape[1]

    # Fused permute: one in-kernel (S, BT, H) -> (BT, S, H) reorder (XLU slot,
    # otherwise idle in this kernel).  Upcast to f32 for tanh/exp (safe on
    # v5e which has no bf16 VPU/EUP); HBM traffic stays in the input dtype.
    x = jnp.transpose(x_ref[...], (1, 0, 2)).astype(jnp.float32)   # (BT, S, H)

    # v = tanh(x @ w + b) for all BT*S rows in a single MXU matmul.
    xm = x.reshape(BT * S, H)
    v = jnp.tanh(
        jnp.dot(xm, w_ref[...], preferred_element_type=jnp.float32)
        + b_ref[...]
    )                                                               # (BT*S, A)

    # vu[b, s] = sum_a v[b, s, a] * u[a]  -> VPU multiply + XLU lane reduce
    # (instead of an N=1, K=A MXU matmul).  Result has S on the lane axis.
    v3 = v.reshape(BT, S, A)
    u3 = u_ref[...].reshape(1, 1, A)
    vu = jnp.sum(v3 * u3, axis=-1)                                  # (BT, S)

    # Numerically-stable softmax over the seq axis (lane axis here), with an
    # exact divide (the denominator is one scalar per batch element; the
    # approximate EUP reciprocal buys nothing in a memory-bound kernel).
    m = jnp.max(vu, axis=-1, keepdims=True)                         # (BT, 1)
    e = jnp.exp(vu - m)                                             # (BT, S)
    denom = jnp.sum(e, axis=-1, keepdims=True)                      # (BT, 1)
    alphas = e / denom                                              # (BT, S)

    out_ref[...] = (x * alphas[:, :, None]).astype(out_ref.dtype)   # (BT, S, H)
    alpha_ref[...] = alphas.astype(alpha_ref.dtype)                 # (BT, S)


def _vmem_limit_bytes():
    """~3/4 of physical VMEM: 96 MiB on v5e/v6e (128 MiB), 48 MiB on v7x (64 MiB)."""
    cap = 64 * 1024 * 1024  # conservative fallback (v7x per-core VMEM)
    try:
        cap = int(pltpu.get_tpu_info().vmem_capacity_bytes)
    except Exception:
        pass
    return int(min((cap * 3) // 4, 112 * 1024 * 1024))


def _choose_bt(B, S, H, A, itemsize, budget_bytes):
    """Batch elements per grid step, sized from the VMEM budget."""
    # Per-batch-element footprint per step: double-buffered input + output
    # blocks, double-buffered alphas, plus f32 intermediates in the body.
    per_b = (
        4 * S * H * itemsize        # 2x input block + 2x output block
        + 2 * S * 4                 # 2x alpha block
        + S * (2 * H + 2 * A) * 4   # f32 x / y / v / v*u intermediates
    )
    bt = max(1, budget_bytes // per_b)
    bt = int(min(bt, B))
    if bt >= 8:
        bt = (bt // 8) * 8          # sublane-aligned batch blocks
    if bt >= B and B >= 16:
        # Keep >= 2 grid steps so dimension_semantics=("parallel",) actually
        # shards across the 2 TensorCores on v7x.
        bt = max(8, ((B // 2) // 8) * 8)
    return max(1, bt)


def order_attention(inputs_sbh, w_omega, b_omega, u_omega, *, bt=None):
    """inputs_sbh: (S, B, H) like the PyTorch module's `inputs`.
    Returns (output (B, S, H), alphas (B, S))."""
    S, B, H = inputs_sbh.shape
    A = w_omega.shape[1]

    vmem_limit = _vmem_limit_bytes()
    if bt is None:
        bt = _choose_bt(B, S, H, A, jnp.dtype(inputs_sbh.dtype).itemsize,
                        int(vmem_limit * 0.8))
    bt = int(min(bt, B))

    # Pad batch so BT divides it; padded batches compute finite garbage that
    # is sliced off afterwards (softmax of a finite vector is finite).
    g = pl.cdiv(B, bt)
    b_pad = g * bt
    x = inputs_sbh
    if b_pad != B:
        x = jnp.pad(x, ((0, 0), (0, b_pad - B), (0, 0)))

    w2 = w_omega.astype(jnp.float32)            # (H, A)
    b2 = b_omega.reshape(1, A).astype(jnp.float32)
    u2 = u_omega.reshape(1, A).astype(jnp.float32)

    out_shapes = (
        jax.ShapeDtypeStruct((b_pad, S, H), inputs_sbh.dtype),
        jax.ShapeDtypeStruct((b_pad, S), jnp.float32),
    )

    # TODO(synk): for very small H (not a multiple of 128), a flattened
    # (B, S*H) lane-dense output slab would avoid masked partial stores.
    fn = pl.pallas_call(
        _order_attention_kernel,
        out_shape=out_shapes,
        grid_spec=pltpu.PrefetchScalarGridSpec(
            num_scalar_prefetch=0,
            grid=(g,),
            in_specs=[
                pl.BlockSpec((S, bt, H), lambda i: (0, i, 0)),   # x slab
                pl.BlockSpec((H, A), lambda i: (0, 0)),          # w, resident
                pl.BlockSpec((1, A), lambda i: (0, 0)),          # b, resident
                pl.BlockSpec((1, A), lambda i: (0, 0)),          # u, resident
            ],
            out_specs=(
                pl.BlockSpec((bt, S, H), lambda i: (i, 0, 0)),   # output (B,S,H)
                pl.BlockSpec((bt, S), lambda i: (i, 0)),         # alphas (B,S)
            ),
        ),
        compiler_params=pltpu.CompilerParams(
            dimension_semantics=("parallel",),   # megacore sharding on v7x
            vmem_limit_bytes=vmem_limit,
        ),
    )
    out, alphas = fn(x, w2, b2, u2)
    if b_pad != B:
        out, alphas = out[:B], alphas[:B]
    return out, alphas


def _reference(inputs_sbh, w_omega, b_omega, u_omega):
    x = jnp.transpose(inputs_sbh, (1, 0, 2))
    v = jnp.tanh(jnp.einsum("bsh,ha->bsa", x, w_omega) + b_omega)
    vu = jnp.einsum("bsa,a->bs", v, u_omega)
    alphas = jax.nn.softmax(vu, axis=1)
    return x * alphas[:, :, None], alphas


if __name__ == "__main__":
    # Small shapes consistent with the module's forward.
    S, B, H, A = 8, 2, 32, 16

    key = jax.random.PRNGKey(0)
    k_x, k_w, k_b, k_u = jax.random.split(key, 4)

    inputs = jax.random.normal(k_x, (S, B, H), dtype=jnp.float32)
    w_omega = jax.random.normal(k_w, (H, A), dtype=jnp.float32)
    b_omega = jax.random.normal(k_b, (A,), dtype=jnp.float32)
    u_omega = jax.random.normal(k_u, (A,), dtype=jnp.float32)

    out, alphas = order_attention(inputs, w_omega, b_omega, u_omega)
    out = jax.block_until_ready(out)
    alphas = jax.block_until_ready(alphas)

    ref_out, ref_alphas = _reference(inputs, w_omega, b_omega, u_omega)
    assert out.shape == (B, S, H) and alphas.shape == (B, S)
    assert jnp.allclose(out, ref_out, atol=1e-4, rtol=1e-4)
    assert jnp.allclose(alphas, ref_alphas, atol=1e-4, rtol=1e-4)

    print("KERNEL_OK")
</pallas_src>

<mosaic_0001>
module attributes {stable_mosaic.version = 11 : i64} {
  func.func @_order_attention_kernel(%arg0: i32, %arg1: memref<8x2x32xf32, #tpu.memory_space<vmem>>, %arg2: memref<32x16xf32, #tpu.memory_space<vmem>>, %arg3: memref<1x16xf32, #tpu.memory_space<vmem>>, %arg4: memref<1x16xf32, #tpu.memory_space<vmem>>, %arg5: memref<2x8x32xf32, #tpu.memory_space<vmem>>, %arg6: memref<2x8xf32, #tpu.memory_space<vmem>>) attributes {dimension_semantics = [#tpu.dimension_semantics<parallel>], iteration_bounds = array<i64: 1>, scalar_prefetch = 0 : i64, scratch_operands = 0 : i64, tpu.core_type = #tpu.core_type<tc>, window_params = [{transform_indices = @transform_0, window_bounds = array<i64: 8, 2, 32>}, {pipeline_mode = #tpu.pipeline_mode<synchronous>, transform_indices = @transform_1, window_bounds = array<i64: 32, 16>}, {pipeline_mode = #tpu.pipeline_mode<synchronous>, transform_indices = @transform_2, window_bounds = array<i64: 1, 16>}, {pipeline_mode = #tpu.pipeline_mode<synchronous>, transform_indices = @transform_3, window_bounds = array<i64: 1, 16>}, {transform_indices = @transform_4, window_bounds = array<i64: 2, 8, 32>}, {transform_indices = @transform_5, window_bounds = array<i64: 2, 8>}]} {
    %c0 = arith.constant 0 : index
    %c0_0 = arith.constant 0 : index
    %c0_1 = arith.constant 0 : index
    %0 = vector.load %arg1[%c0, %c0_0, %c0_1] : memref<8x2x32xf32, #tpu.memory_space<vmem>>, vector<8x2x32xf32>
    %1 = tpu.transpose %0, [1, 0, 2] : vector<8x2x32xf32> -> vector<2x8x32xf32>
    %2 = vector.shape_cast %1 : vector<2x8x32xf32> to vector<16x32xf32>
    %c0_2 = arith.constant 0 : index
    %c0_3 = arith.constant 0 : index
    %3 = vector.load %arg2[%c0_2, %c0_3] : memref<32x16xf32, #tpu.memory_space<vmem>>, vector<32x16xf32>
    %cst = arith.constant dense<0.000000e+00> : vector<16x16xf32>
    %4 = tpu.matmul %2, %3, %cst {dimension_numbers = #tpu.dot_dimension_numbers<[1], [0], [0], [1], [0, 0, 1, 1], [], []>} : vector<16x32xf32>, vector<32x16xf32>, vector<16x16xf32> -> vector<16x16xf32>
    %c0_4 = arith.constant 0 : index
    %c0_5 = arith.constant 0 : index
    %5 = vector.load %arg3[%c0_4, %c0_5] : memref<1x16xf32, #tpu.memory_space<vmem>>, vector<1x16xf32>
    %6 = vector.broadcast %5 : vector<1x16xf32> to vector<16x16xf32>
    %7 = arith.addf %4, %6 : vector<16x16xf32>
    %8 = math.tanh %7 : vector<16x16xf32>
    %9 = vector.shape_cast %8 : vector<16x16xf32> to vector<2x8x16xf32>
    %c0_6 = arith.constant 0 : index
    %c0_7 = arith.constant 0 : index
    %10 = vector.load %arg4[%c0_6, %c0_7] : memref<1x16xf32, #tpu.memory_space<vmem>>, vector<1x16xf32>
    %11 = vector.shape_cast %10 : vector<1x16xf32> to vector<1x1x16xf32>
    %12 = vector.broadcast %11 : vector<1x1x16xf32> to vector<2x8x16xf32>
    %13 = arith.mulf %9, %12 : vector<2x8x16xf32>
    %cst_8 = arith.constant dense<0.000000e+00> : vector<2x8xf32>
    %14 = vector.multi_reduction <add>, %13, %cst_8 [2] : vector<2x8x16xf32> to vector<2x8xf32>
    %cst_9 = arith.constant dense<0xFF800000> : vector<2xf32>
    %15 = vector.multi_reduction <maximumf>, %14, %cst_9 [1] : vector<2x8xf32> to vector<2xf32>
    %16 = vector.shape_cast %15 : vector<2xf32> to vector<2x1xf32>
    %17 = vector.broadcast %16 : vector<2x1xf32> to vector<2x8xf32>
    %18 = arith.subf %14, %17 : vector<2x8xf32>
    %19 = math.exp %18 : vector<2x8xf32>
    %cst_10 = arith.constant dense<0.000000e+00> : vector<2xf32>
    %20 = vector.multi_reduction <add>, %19, %cst_10 [1] : vector<2x8xf32> to vector<2xf32>
    %21 = vector.shape_cast %20 : vector<2xf32> to vector<2x1xf32>
    %22 = vector.broadcast %21 : vector<2x1xf32> to vector<2x8xf32>
    %23 = arith.divf %19, %22 : vector<2x8xf32>
    %24 = vector.shape_cast %23 : vector<2x8xf32> to vector<2x8x1xf32>
    %25 = vector.broadcast %24 : vector<2x8x1xf32> to vector<2x8x32xf32>
    %26 = arith.mulf %1, %25 : vector<2x8x32xf32>
    %c0_11 = arith.constant 0 : index
    %c0_12 = arith.constant 0 : index
    %c0_13 = arith.constant 0 : index
    %27 = vector.load %arg5[%c0_11, %c0_12, %c0_13] : memref<2x8x32xf32, #tpu.memory_space<vmem>>, vector<2x8x32xf32>
    tpu.vector_store %arg5[%c0_11, %c0_12, %c0_13], %26 {strides = array<i32>} : memref<2x8x32xf32, #tpu.memory_space<vmem>>, vector<2x8x32xf32>,
    %c0_14 = arith.constant 0 : index
    %c0_15 = arith.constant 0 : index
    %28 = vector.load %arg6[%c0_14, %c0_15] : memref<2x8xf32, #tpu.memory_space<vmem>>, vector<2x8xf32>
    tpu.vector_store %arg6[%c0_14, %c0_15], %23 {strides = array<i32>} : memref<2x8xf32, #tpu.memory_space<vmem>>, vector<2x8xf32>,
    return
  }
  func.func @transform_0(%arg0: i32) -> (i32, i32, i32) {
    %c0_i32 = arith.constant 0 : i32
    %c0_i32_0 = arith.constant 0 : i32
    %c0_i32_1 = arith.constant 0 : i32
    return %c0_i32, %arg0, %c0_i32_0 : i32, i32, i32
  }
  func.func @transform_1(%arg0: i32) -> (i32, i32) {
    %c0_i32 = arith.constant 0 : i32
    %c0_i32_0 = arith.constant 0 : i32
    %c0_i32_1 = arith.constant 0 : i32
    return %c0_i32, %c0_i32_0 : i32, i32
  }
  func.func @transform_2(%arg0: i32) -> (i32, i32) {
    %c0_i32 = arith.constant 0 : i32
    %c0_i32_0 = arith.constant 0 : i32
    %c0_i32_1 = arith.constant 0 : i32
    return %c0_i32, %c0_i32_0 : i32, i32
  }
  func.func @transform_3(%arg0: i32) -> (i32, i32) {
    %c0_i32 = arith.constant 0 : i32
    %c0_i32_0 = arith.constant 0 : i32
    %c0_i32_1 = arith.constant 0 : i32
    return %c0_i32, %c0_i32_0 : i32, i32
  }
  func.func @transform_4(%arg0: i32) -> (i32, i32, i32) {
    %c0_i32 = arith.constant 0 : i32
    %c0_i32_0 = arith.constant 0 : i32
    %c0_i32_1 = arith.constant 0 : i32
    return %arg0, %c0_i32, %c0_i32_0 : i32, i32, i32
  }
  func.func @transform_5(%arg0: i32) -> (i32, i32) {
    %c0_i32 = arith.constant 0 : i32
    %c0_i32_0 = arith.constant 0 : i32
    return %arg0, %c0_i32 : i32, i32
  }
}

</mosaic_0001>

<bundles_post_ra>
// kernel: tpu_custom_call.1
= control target key start
LH: loop header
LB: loop body
LE: loop exit
PB: predicated region body
PF: predicated region fallthrough
CT: control target
= control target key end

     0   :  { %11 = vsyncpa [#allocation3], 0  ;;  %v33_v3 = vlaneseq  ;;  %v423_v12 = vmov 1934713408   ;;  %s544_s0 = inlined_call_operand.vmem [shape: f32[8,2,32], index: 0, kind: input, shape index: {}]   ;;  %s545_s1 = inlined_call_operand.vmem [shape: f32[32,16], index: 1, kind: input, shape index: {}]   ;;  %s546_s2 = inlined_call_operand.vmem [shape: f32[1,16], index: 2, kind: input, shape index: {}]   ;;  %s547_s3 = inlined_call_operand.vmem [shape: f32[1,16], index: 3, kind: input, shape index: {}]   ;;  %s548_s4 = inlined_call_operand.hbm [shape: f32[2,8,32], index: 4, kind: output, shape index: {0}]   ;;  %s549_s5 = inlined_call_operand.hbm [shape: f32[2,8], index: 5, kind: output, shape index: {1}]  }
   0x1   :  { %v79_v0 = vld [vmem:[%s545_s1] sm:$0xff]  ;;  %v80_v1 = vld [vmem:[%s545_s1 + $0x8] sm:$0xff]  ;;  %v81_v2 = vld [vmem:[%s545_s1 + $0x10] sm:$0xff]  ;;  %v63_v13 = vunpack.c.l.s4 %v423_v12 }
   0x2   :  { %v338_v4 = vpack.c.bf16 %v80_v1, %v79_v0  ;;  %v82_v5 = vld [vmem:[%s545_s1 + $0x18] sm:$0xff]  ;;  %v371_v7 = vld.sshfl [vmem:[%s544_s0] sm:$0xf pattern:$0x76325410]  ;;  %v474_v8 = vshrl.u32 %v33_v3, 7 }
   0x3   :  { %v342_v6 = vpack.c.bf16 %v82_v5, %v81_v2  ;;  %v372_v9 = vld.sshfl [vmem:[%s544_s0 + $0x2] sm:$0xf pattern:$0x76325410] }
   0x4   :  { %339 = vmatprep.subr.bf16.mxu0 %v338_v4  ;;  %v373_v10 = vld.sshfl [vmem:[%s544_s0 + $0x8] sm:$0xf pattern:$0x76325410] }
   0x5   :  { %341 = vmatpush3.bf16.msra.mxu0 %v338_v4  ;;  %v374_v11 = vld.sshfl [vmem:[%s544_s0 + $0xa] sm:$0xf pattern:$0x76325410] }
   0x6   :  { %343 = vmatprep.subr.bf16.mxu0 %v342_v6 }
   0x7   :  { %12 = vsyncpa [#allocation5], 0  ;;  %v64_v14 = vunpack.c.0.s8 %v63_v13  ;;  %v61_v15 = vcombine.low %v371_v7, %v372_v9  ;;  %v69_v16 = vcombine.low %v373_v10, %v374_v11  ;;  %vm90_vm0 = vcmask 261120   ;;  %v317_v22 = vld [vmem:[%s546_s2] ss:$0 sm:$0xff]  ;;  %s425_s2 = smov [#allocation2]  }
   0x8   :  { %v320_v27 = vld [vmem:[%s547_s3] ss:$0 sm:$0xff]  ;;  %vm183_vm1 = vcmask 130048   ;;  %v193_v34 = vand.u32 127, %v33_v3  ;;  %vm202_vm2 = vcmask 1041409   ;;  %vm205_vm3 = vcmask 58368  }
   0x9   :  { %345 = vmatpush3.bf16.msra.mxu0 %v342_v6  ;;  %v67_v17 = vsub.s32 %v64_v14, %v474_v8  ;;  %v424_v42 = vmov 0   ;;  %v212_v43 = vsub.s32 0, %v474_v8  ;;  %v216_v44 = vsub.s32 1, %v474_v8  ;;  %s292_s3 = sshll.u32 %s425_s2, 4  ;;  %s426_s11 = smov [#allocation4]   ;;  %s293_s3 = int_to_ptr.vmem [resolvable:$true] %s292_s3 }
   0xa   :  { %v196_v36 = vsub.s32 %v193_v34, %v474_v8  ;;  %354 = vset.pattern.permute.xlu0 %v424_v42  ;;  %353 = vset.pattern.permute.xlu1 %v424_v42  ;;  %s305_s12 = sshll.u32 %s426_s11, 4  ;;  %s375_s13 = scalar_lea.vmem %s293_s3, 256  ;;  %s510_s12 = int_to_ptr.vmem [resolvable:$true] %s305_s12 }
   0xb   :  { %v68_v18 = vrot.slane %v61_v15, %v67_v17  ;;  %v76_v19 = vrot.slane %v69_v16, %v67_v17  ;;  %p376_p0 = scmp.ne.s32.totalorder %s293_s3, %s375_s13  ;;  %p380_p1 = scmp.lt.s32.totalorder %s293_s3, %s293_s3 }
   0xc   :  { %p381_p2 = scmp.lt.s32.totalorder %s375_s13, %s375_s13 }
   0xd   :  { %v486_v20 = vcombine.low %v68_v18, %v76_v19  ;;  %v488_v21 = vcombine.high %v68_v18, %v76_v19 }
   0xe   :  { %p382_p3 = por %p381_p2, %p380_p1 }
   0xf   :  { %335 = vmatprep.mubr.msk.f32.mxu0 %vm90_vm0, %v486_v20 }
  0x10   :  { %336 = vmatmul.mubr.msk.f32.vlgmr.msra.gmra.mrb[0].mxu0 %vm90_vm0, %v488_v21  ;;  %p383_p4 = pnand %p382_p3, %p376_p0 }
  0xe3   :  { %v337_v23 = vpop.f32.mrb[0].mxu0 }
  0xe4   :  { %v169_v24 = vadd.f32 %v337_v23, %v317_v22  ;;  %v163_v25 = vpop.f32.mrb[1].mxu0 }
  0xe5   :  { %v164_v26 = vadd.f32 %v317_v22, %v163_v25 }
  0xe6   :  { %359 = vtanh.f32 %v169_v24 }
  0xe7   :  { %361 = vtanh.f32 %v164_v26 }
  0xf0   :  { %v360_v28 = vpop.eup %359 }
  0xf1   :  { %v362_v29 = vpop.eup %361  ;;  %v182_v32 = vmul.f32 %v360_v28, %v320_v27 }
  0xf2   :  { %v181_v30 = vmul.f32 %v362_v29, %v320_v27 }
  0xf3   :  { %v187_v33 = vsel %vm183_vm1, %v182_v32, 0.0 }
  0xf4   :  { %v184_v31 = vsel %vm183_vm1, %v181_v30, 0.0 }
  0xf5   :  { %185 = vadd.xlane.f32.xlu0 %v184_v31 }
  0xf9   :  { %188 = vadd.xlane.f32.xlu0 %v187_v33 }
 0x182   :  { %v186_v35 = vpop.xlane.xlu0 %185 }
 0x183   :  { %v197_v38 = vrot.slane %v186_v35, %v196_v36 }
 0x186   :  { %v189_v37 = vpop.xlane.xlu0 %188 }
 0x187   :  { %v201_v39 = vrot.slane %v189_v37, %v196_v36 }
 0x189   :  { %v203_v40 = vsel %vm202_vm2, %v201_v39, %v197_v38 }
 0x18a   :  { %v206_v41 = vsel %vm205_vm3, %v203_v40, -inf }
 0x18b   :  { %207 = vmax.xlane.f32.xlu1 %v206_v41 }
 0x218   :  { %v208_v45 = vpop.xlane.xlu1 %207 }
 0x219   :  { %v213_v46 = vrot.slane %v208_v45, %v212_v43  ;;  %v217_v47 = vrot.slane %v208_v45, %v216_v44 }
 0x21b   :  { %v220_v48 = vsub.f32 %v186_v35, %v213_v46  ;;  %v221_v49 = vsub.f32 %v189_v37, %v217_v47 }
 0x21d   :  { %v222_v50 = vmul.f32 1.442695, %v220_v48  ;;  %v224_v51 = vmul.f32 1.442695, %v221_v49 }
 0x21f   :  { %363 = vpow2.f32 %v222_v50 }
 0x220   :  { %365 = vpow2.f32 %v224_v51 }
 0x229   :  { %v364_v52 = vpop.eup %363 }
 0x22a   :  { %v366_v53 = vpop.eup %365  ;;  %229 = vperm.xlu1 %353, %v364_v52  }
 0x22b   :  { %232 = vperm.xlu0 %354, %v366_v53  }
 0x2a9   :  { %v230_v54 = vpop.permute.xlu1 %229 }
 0x2aa   :  { %v233_v55 = vpop.permute.xlu0 %232  ;;  %v237_v56 = vrot.slane %v230_v54, %v196_v36 }
 0x2ab   :  { %v241_v57 = vrot.slane %v233_v55, %v196_v36 }
 0x2ad   :  { %v242_v58 = vsel %vm202_vm2, %v241_v57, %v237_v56 }
 0x2ae   :  { %v244_v59 = vsel %vm205_vm3, %v242_v58, 0.0 }
 0x2af   :  { %245 = vadd.xlane.f32.xlu1 %v244_v59 }
 0x33c   :  { %v246_v60 = vpop.xlane.xlu1 %245 }
 0x33d   :  { %v251_v61 = vrot.slane %v246_v60, %v212_v43  ;;  %v255_v62 = vrot.slane %v246_v60, %v216_v44 }
 0x33f   :  { %367 = vrcp.f32 %v251_v61 }
 0x340   :  { %369 = vrcp.f32 %v255_v62 }
 0x349   :  { %v368_v63 = vpop.eup %367 }
 0x34a   :  { %v259_v0 = vmul.f32 %v368_v63, %v364_v52  ;;  %v370_v1 = vpop.eup %369 }
 0x34b   :  { %v261_v2 = vmul.f32 %v370_v1, %v366_v53 }
 0x34c   :  { %264 = vperm.xlu0 %354, %v259_v0  }
 0x350   :  { %269 = vperm.xlu0 %354, %v261_v2  }
 0x3cb   :  { %v265_v3 = vpop.permute.xlu0 %264 }
 0x3cc   :  { %v272_v4 = vmul.f32 %v265_v3, %v486_v20  ;;  %v279_v6 = vrot.slane %v265_v3, %v196_v36 }
 0x3ce   :  { %274 = vst.msk [vmem:[#allocation2] sm:$0xff] %vm90_vm0, %v272_v4 }
 0x3cf   :  { %v270_v5 = vpop.permute.xlu0 %269 }
 0x3d0   :  { %v273_v7 = vmul.f32 %v270_v5, %v488_v21  ;;  %v283_v8 = vrot.slane %v270_v5, %v196_v36 }
 0x3d2   :  { %275 = vst.msk [vmem:[#allocation2 + $0x8] sm:$0xff] %vm90_vm0, %v273_v7  ;;  %v284_v9 = vsel %vm202_vm2, %v283_v8, %v279_v6 }
 0x3d3   :  { %386 = shalt.err (!%p383_p4)
}
 0x3d4   :  { %s387_s16 = scalar_lea.hbm %s548_s4, 256 }
 0x3d5   :  { %p388_p5 = scmp.ne.s32.totalorder %s548_s4, %s387_s16  ;;  %p391_p6 = scmp.lt.u32.totalorder %s387_s16, %s548_s4 }
 0x3d7   :  { %p393_p7 = pnand %p391_p6, %p388_p5 }
 0x3d9   :  { %396 = shalt.err (!%p393_p7)
}
 0x3da   :  { %s427_s21 = smov 128   ;;  %s428_s22 = smov 8   ;;  %286 = vst.msk [vmem:[#allocation4] sm:$0x3] %vm205_vm3, %v284_v9 }
 0x3db   :  { %298 = dma.vmem_to_hbm [thread:$0]  %s293_s3, 256, %s548_s4, [#allocation3], %s427_s21, %s427_s21, %s428_s22  }
 0x3dc   :  { %s397_s25 = scalar_lea.vmem %s510_s12, 32  ;;  %p402_p9 = scmp.lt.s32.totalorder %s510_s12, %s510_s12 }
 0x3dd   :  { %p398_p8 = scmp.ne.s32.totalorder %s510_s12, %s397_s25  ;;  %p403_p10 = scmp.lt.s32.totalorder %s397_s25, %s397_s25 }
 0x3df   :  { %p404_p11 = por %p403_p10, %p402_p9 }
 0x3e1   :  { %p405_p12 = pnand %p404_p11, %p398_p8 }
 0x3e3   :  { %408 = shalt.err (!%p405_p12)
}
 0x3e4   :  { %s409_s28 = scalar_lea.hbm %s549_s5, 32 }
 0x3e5   :  { %p410_p13 = scmp.ne.s32.totalorder %s549_s5, %s409_s28  ;;  %p413_p0 = scmp.lt.u32.totalorder %s409_s28, %s549_s5 }
 0x3e7   :  { %p415_p1 = pnand %p413_p0, %p410_p13 }
 0x3e9   :  { %418 = shalt.err (!%p415_p1)
}
 0x3ea   :  { %308 = dma.vmem_to_hbm [thread:$0]  %s510_s12, 32, %s549_s5, [#allocation5]  }
 0x3eb   :  { %419 = dma.done.wait [#allocation3], 256  }
 0x3ec   :  { %420 = vsyncadd [#allocation3], 4294967040 }
 0x3ed   :  { %421 = dma.done.wait [#allocation5], 32  }
 0x3ee   :  { %422 = vsyncadd [#allocation5], 4294967264 }
 0x3ef   :  { %315 = vsyncpa [#allocation3], 1 }
 0x3f0   :  { %316 = vsyncpa [#allocation5], 1 }

</bundles_post_ra>
